<compile_context>
chip_gen: v7x
topology: tpu7x:2x2x1
jax: 0.10.0
libtpu: 0.0.40
codegen_flags: <defaults>
</compile_context>

<pallas_src>
import functools

import jax
import jax.numpy as jnp
from jax import lax
from jax.experimental import pallas as pl
from jax.experimental.pallas import tpu as pltpu

NEG_SLOPE = 0.2
UP_K = 3
DN_K = 5                      # ctor's `2` is vid_len, not dilation -> d=1 for both.

_MAX_VPU_MIX_C = 8            # <= this: unrolled VPU FMA mix (2*C^2 VALU ops/elem).
_MAX_KRON_CT = 1024           # fused-MXU mix viable while C*T stays below the
                              # compute/bandwidth crossover and kron fits VMEM.
_CHANNEL_UNROLL_MAX = 8       # larger branches use pl.loop instead of unrolling.
_VMEM_WORKSET_BUDGET = 32 << 20   # in+out double buffers (4 blocks of f32).
_MAX_TILE_ELEMS = 8 * 1024    # cap T*s_tile so per-channel values stay in vregs.


def _msc_kernel(x_ref, *rest, C, T, c2, s_tile, mix):
    """One block: channel mix (+LeakyReLU) + two causal depthwise temporal
    convolutions (+bias, +residual), one lane-dense store per channel.

    mix == "vpu" : refs are (C, T, s_tile); mix = unrolled FMAs from SMEM scalars.
    mix == "mxu" : refs are (C*T, s_tile); mix = one MXU matmul vs kron(w, I_T).
    mix == "none": refs are (C, T, s_tile); mix already applied by XLA outside.
    """
    if mix == "none":
        wu_ref, bu_ref, wd_ref, bd_ref, o_ref = rest
        wf_ref = None
    else:
        wf_ref, wu_ref, bu_ref, wd_ref, bd_ref, o_ref = rest

    # Hoisted once (JAX does not CSE broadcasts): time index for causal masks.
    row_idx = lax.broadcasted_iota(jnp.int32, (T, s_tile), 0)

    if mix == "mxu":
        # Fused 1x1x1 mix on the MXU.  Result is staged in the output block;
        # each depthwise channel below reads its own rows before overwriting
        # them, so no extra VMEM scratch is needed.
        y = jnp.dot(wf_ref[...], x_ref[...], preferred_element_type=jnp.float32)
        o_ref[...] = jnp.where(y >= 0, y, NEG_SLOPE * y)

    def x5_row(co):
        """LeakyReLU(conv_fuse(x)) for channel `co` of this tile: (T, s_tile)."""
        if mix == "vpu":
            acc = x_ref[0] * wf_ref[co * C]
            for c in range(1, C):
                acc = acc + x_ref[c] * wf_ref[co * C + c]
            return jnp.where(acc >= 0, acc, NEG_SLOPE * acc)
        if mix == "none":
            v = x_ref[co]                      # channel mix already applied
            return jnp.where(v >= 0, v, NEG_SLOPE * v)
        return o_ref[pl.ds(co * T, T), :]      # "mxu": staged above

    def write_row(co, val):
        if mix == "mxu":
            o_ref[pl.ds(co * T, T), :] = val   # 8-aligned, unmasked store
        else:
            o_ref[co] = val

    def causal_branch(w_ref, b_ref, k, ch0):
        def one_channel(ch):
            co = ch0 + ch
            y = x5_row(co)                                     # (T, s_tile)
            # Residual + conv bias + zero-lag tap fused; remaining taps are
            # XLU rolls masked below the causal horizon, accumulated in
            # registers, then ONE lane-dense store per channel.
            acc = y * (1.0 + w_ref[ch * k + (k - 1)]) + b_ref[ch]
            for j in range(k - 1):
                delta = k - 1 - j
                if delta >= T:
                    continue       # this tap only ever sees the causal zero pad
                sh = pltpu.roll(y, shift=delta, axis=0)
                sh = jnp.where(row_idx >= delta, sh, 0.0)
                acc = acc + w_ref[ch * k + j] * sh
            write_row(co, acc)

        if mix == "mxu" or c2 <= _CHANNEL_UNROLL_MAX:
            for ch in range(c2):               # small / statically-sliced case
                one_channel(ch)
        else:
            pl.loop(0, c2)(one_channel)        # bounds live ranges for big c2

    causal_branch(wu_ref, bu_ref, UP_K, 0)
    causal_branch(wd_ref, bd_ref, DN_K, c2)


def _round_down_lanes(v):
    return (v // 128) * 128


def _choose_s_tile(C, T, S):
    """Spatial (lane) tile: keeps the 4 double-buffered (C*T, s_tile) f32
    blocks under the VMEM budget and the per-channel (T, s_tile) working
    values comfortably inside the register file."""
    budget_lanes = _round_down_lanes(_VMEM_WORKSET_BUDGET // (4 * 4 * C * T))
    reg_lanes = _round_down_lanes(_MAX_TILE_ELEMS // max(T, 1))
    lanes = max(128, min(1024, budget_lanes, reg_lanes))
    return S if S <= lanes else lanes


def multiscale_causal_conv(x, w_fuse, w_up, b_up, w_down, b_down,
                           *, s_tile=None, mix=None):
    """x: (B, C, T, H, W) -> (B, C, T, H, W); forward of MultiscaleCausalConvOldBug."""
    B, C, T, H, W = x.shape
    c2 = C // 2
    assert C == 2 * c2, "c_final must be even"
    S = H * W
    out_dtype = x.dtype

    xf = x.astype(jnp.float32)
    wf = w_fuse.astype(jnp.float32)
    wu = w_up.astype(jnp.float32).reshape(-1)      # 1D SMEM (avoid 2D padding)
    bu = b_up.astype(jnp.float32)
    wd = w_down.astype(jnp.float32).reshape(-1)
    bd = b_down.astype(jnp.float32)

    if mix is None:
        if C <= _MAX_VPU_MIX_C:
            mix = "vpu"
        elif T % 8 == 0 and C * T <= _MAX_KRON_CT:
            mix = "mxu"
        else:
            # TODO(synk): per-timestep MXU mix / channel-tiled depthwise pass
            # for very large C*T instead of this extra-HBM-pass fallback.
            mix = "none"

    if s_tile is None:
        s_tile = _choose_s_tile(C, T, S)
    n_s = pl.cdiv(S, s_tile)   # ragged last spatial block handled by Pallas masking

    smem = pl.BlockSpec(memory_space=pltpu.MemorySpace.SMEM)
    vmem = pl.BlockSpec(memory_space=pltpu.MemorySpace.VMEM)

    if mix == "mxu":
        # 2D (channel*time, spatial) view of the same HBM bytes (free reshape);
        # the 1x1x1 mix becomes one MXU matmul per block vs kron(w_fuse, I_T).
        x4 = xf.reshape(B, C * T, S)
        w_big = jnp.kron(wf, jnp.eye(T, dtype=jnp.float32))
        blk = pl.BlockSpec((None, C * T, s_tile), lambda b, s: (b, 0, s))
        operands = (x4, w_big, wu, bu, wd, bd)
        in_specs = [blk, vmem, smem, smem, smem, smem]
        out_struct = jax.ShapeDtypeStruct((B, C * T, S), jnp.float32)
    else:
        x4 = xf.reshape(B, C, T, S)
        blk = pl.BlockSpec((None, C, T, s_tile), lambda b, s: (b, 0, 0, s))
        if mix == "vpu":
            operands = (x4, wf.reshape(-1), wu, bu, wd, bd)
            in_specs = [blk, smem, smem, smem, smem, smem]
        else:  # "none": 1x1x1 mix on XLA's MXU (default precision; bandwidth bound)
            x4 = jnp.einsum("oc,bcts->bots", wf, x4)
            operands = (x4, wu, bu, wd, bd)
            in_specs = [blk, smem, smem, smem, smem]
        out_struct = jax.ShapeDtypeStruct((B, C, T, S), jnp.float32)

    block_bytes = 4 * C * T * s_tile
    wbig_bytes = 4 * (C * T) * (C * T) if mix == "mxu" else 0
    vmem_limit = int(min(max(4 * block_bytes + wbig_bytes + (2 << 20), 16 << 20),
                         48 << 20))              # <= 48 MiB: safe on v7x's 64 MiB

    kern = functools.partial(_msc_kernel, C=C, T=T, c2=c2, s_tile=s_tile, mix=mix)
    out = pl.pallas_call(
        kern,
        out_shape=out_struct,
        grid=(B, n_s),
        in_specs=in_specs,
        out_specs=blk,
        compiler_params=pltpu.CompilerParams(
            dimension_semantics=("parallel", "parallel"),
            vmem_limit_bytes=vmem_limit),
    )(*operands)

    return out.reshape(B, C, T, H, W).astype(out_dtype)


def reference_forward(x, w_fuse, w_up, b_up, w_down, b_down):
    """Pure-JAX reference of the PyTorch forward (input_type='3d')."""
    B, C, T, H, W = x.shape
    c2 = C // 2
    y = jnp.einsum("oc,bcthw->bothw", w_fuse, x, precision=lax.Precision.HIGHEST)
    y = jnp.where(y >= 0, y, NEG_SLOPE * y)

    def dw(xh, w, b, k):
        acc = xh + b[None, :, None, None, None]
        for j in range(k):
            delta = k - 1 - j
            shifted = jnp.pad(
                xh, ((0, 0), (0, 0), (delta, 0), (0, 0), (0, 0)))[:, :, :T]
            acc = acc + w[:, j][None, :, None, None, None] * shifted
        return acc

    up = dw(y[:, :c2], w_up, b_up, UP_K)
    dn = dw(y[:, c2:2 * c2], w_down, b_down, DN_K)
    return jnp.concatenate([up, dn], axis=1)


def _bf16_round(a):
    # Round test data to bf16-representable values so the result is insensitive
    # to the MXU's f32 matmul pass count (products are then exact in f32).
    return a.astype(jnp.bfloat16).astype(jnp.float32)


def _make_inputs(key, B, C, T, H, W):
    c2 = C // 2
    ks = jax.random.split(key, 6)
    x = _bf16_round(jax.random.normal(ks[0], (B, C, T, H, W), jnp.float32))
    w_fuse = _bf16_round(jax.random.uniform(ks[1], (C, C), jnp.float32, -0.5, 0.5))
    w_up = _bf16_round(jax.random.uniform(ks[2], (c2, UP_K), jnp.float32, -0.5, 0.5))
    b_up = _bf16_round(jax.random.uniform(ks[3], (c2,), jnp.float32, -0.5, 0.5))
    w_dn = _bf16_round(jax.random.uniform(ks[4], (c2, DN_K), jnp.float32, -0.5, 0.5))
    b_dn = _bf16_round(jax.random.uniform(ks[5], (c2,), jnp.float32, -0.5, 0.5))
    return x, w_fuse, w_up, b_up, w_dn, b_dn


def _check(name, out, ref, tol=1e-3):
    assert out.shape == ref.shape, (name, out.shape, ref.shape)
    err = float(jnp.max(jnp.abs(out - ref)))
    assert err <= tol, f"{name}: max abs err {err} > {tol}"


if __name__ == "__main__":
    key = jax.random.PRNGKey(0)
    k1, k2 = jax.random.split(key)

    # Case 1: tiny C -> in-kernel VPU channel mix, single spatial block.
    args1 = _make_inputs(k1, B=2, C=4, T=8, H=8, W=16)
    out1 = jax.block_until_ready(multiscale_causal_conv(*args1))
    ref1 = jax.block_until_ready(reference_forward(*args1))
    _check("vpu-mix", out1, ref1)

    # Case 2: larger C -> fused in-kernel MXU mix (kron(w, I_T) matmul),
    # forced s_tile=128 so the last spatial block is ragged (S=300).
    args2 = _make_inputs(k2, B=1, C=128, T=8, H=12, W=25)
    out2 = jax.block_until_ready(multiscale_causal_conv(*args2, s_tile=128))
    ref2 = jax.block_until_ready(reference_forward(*args2))
    _check("mxu-mix", out2, ref2)

    # Case 3: two-pass fallback path (XLA mix outside + depthwise kernel).
    out3 = jax.block_until_ready(multiscale_causal_conv(*args1, mix="none"))
    _check("two-pass", out3, ref1)

    # Case 4: fallback path with enough channels to exercise the pl.loop
    # (dynamic channel index) variant of the depthwise pass.
    args4 = _make_inputs(k2, B=1, C=32, T=8, H=8, W=16)
    out4 = jax.block_until_ready(multiscale_causal_conv(*args4, mix="none"))
    ref4 = jax.block_until_ready(reference_forward(*args4))
    _check("two-pass-loop", out4, ref4)

    print("KERNEL_OK")
</pallas_src>

<mosaic_0001>
module attributes {stable_mosaic.version = 11 : i64} {
  func.func @_msc_kernel(%arg0: i32, %arg1: i32, %arg2: memref<1x4x8x128xf32, #tpu.memory_space<vmem>>, %arg3: memref<16xf32, #tpu.memory_space<smem>>, %arg4: memref<6xf32, #tpu.memory_space<smem>>, %arg5: memref<2xf32, #tpu.memory_space<smem>>, %arg6: memref<10xf32, #tpu.memory_space<smem>>, %arg7: memref<2xf32, #tpu.memory_space<smem>>, %arg8: memref<1x4x8x128xf32, #tpu.memory_space<vmem>>) attributes {dimension_semantics = [#tpu.dimension_semantics<parallel>, #tpu.dimension_semantics<parallel>], iteration_bounds = array<i64: 2, 1>, scalar_prefetch = 0 : i64, scratch_operands = 0 : i64, tpu.core_type = #tpu.core_type<tc>, window_params = [{transform_indices = @transform_0, window_bounds = array<i64: 1, 4, 8, 128>}, {transform_indices = @transform_1, window_bounds = array<i64: 16>}, {transform_indices = @transform_2, window_bounds = array<i64: 6>}, {transform_indices = @transform_3, window_bounds = array<i64: 2>}, {transform_indices = @transform_4, window_bounds = array<i64: 10>}, {transform_indices = @transform_5, window_bounds = array<i64: 2>}, {transform_indices = @transform_6, window_bounds = array<i64: 1, 4, 8, 128>}]} {
    %0 = tpu.iota {dimensions = array<i32: 0>} : vector<8x128xi32>
    %c0 = arith.constant 0 : index
    %c0_0 = arith.constant 0 : index
    %c0_1 = arith.constant 0 : index
    %c0_2 = arith.constant 0 : index
    %1 = vector.load %arg2[%c0, %c0_0, %c0_1, %c0_2] : memref<1x4x8x128xf32, #tpu.memory_space<vmem>>, vector<1x1x8x128xf32>
    %2 = vector.shape_cast %1 : vector<1x1x8x128xf32> to vector<8x128xf32>
    %c0_3 = arith.constant 0 : index
    %3 = memref.load %arg3[%c0_3] : memref<16xf32, #tpu.memory_space<smem>>
    %4 = vector.broadcast %3 : f32 to vector<8x128xf32>
    %5 = arith.mulf %2, %4 : vector<8x128xf32>
    %c0_4 = arith.constant 0 : index
    %c1 = arith.constant 1 : index
    %c0_5 = arith.constant 0 : index
    %c0_6 = arith.constant 0 : index
    %6 = vector.load %arg2[%c0_4, %c1, %c0_5, %c0_6] : memref<1x4x8x128xf32, #tpu.memory_space<vmem>>, vector<1x1x8x128xf32>
    %7 = vector.shape_cast %6 : vector<1x1x8x128xf32> to vector<8x128xf32>
    %c1_7 = arith.constant 1 : index
    %8 = memref.load %arg3[%c1_7] : memref<16xf32, #tpu.memory_space<smem>>
    %9 = vector.broadcast %8 : f32 to vector<8x128xf32>
    %10 = arith.mulf %7, %9 : vector<8x128xf32>
    %11 = arith.addf %5, %10 : vector<8x128xf32>
    %c0_8 = arith.constant 0 : index
    %c2 = arith.constant 2 : index
    %c0_9 = arith.constant 0 : index
    %c0_10 = arith.constant 0 : index
    %12 = vector.load %arg2[%c0_8, %c2, %c0_9, %c0_10] : memref<1x4x8x128xf32, #tpu.memory_space<vmem>>, vector<1x1x8x128xf32>
    %13 = vector.shape_cast %12 : vector<1x1x8x128xf32> to vector<8x128xf32>
    %c2_11 = arith.constant 2 : index
    %14 = memref.load %arg3[%c2_11] : memref<16xf32, #tpu.memory_space<smem>>
    %15 = vector.broadcast %14 : f32 to vector<8x128xf32>
    %16 = arith.mulf %13, %15 : vector<8x128xf32>
    %17 = arith.addf %11, %16 : vector<8x128xf32>
    %c0_12 = arith.constant 0 : index
    %c3 = arith.constant 3 : index
    %c0_13 = arith.constant 0 : index
    %c0_14 = arith.constant 0 : index
    %18 = vector.load %arg2[%c0_12, %c3, %c0_13, %c0_14] : memref<1x4x8x128xf32, #tpu.memory_space<vmem>>, vector<1x1x8x128xf32>
    %19 = vector.shape_cast %18 : vector<1x1x8x128xf32> to vector<8x128xf32>
    %c3_15 = arith.constant 3 : index
    %20 = memref.load %arg3[%c3_15] : memref<16xf32, #tpu.memory_space<smem>>
    %21 = vector.broadcast %20 : f32 to vector<8x128xf32>
    %22 = arith.mulf %19, %21 : vector<8x128xf32>
    %23 = arith.addf %17, %22 : vector<8x128xf32>
    %cst = arith.constant 0.000000e+00 : f32
    %24 = vector.broadcast %cst : f32 to vector<8x128xf32>
    %25 = arith.cmpf oge, %23, %24 : vector<8x128xf32>
    %cst_16 = arith.constant 2.000000e-01 : f32
    %26 = vector.broadcast %cst_16 : f32 to vector<8x128xf32>
    %27 = arith.mulf %26, %23 : vector<8x128xf32>
    %28 = arith.select %25, %23, %27 : vector<8x128xi1>, vector<8x128xf32>
    %c2_17 = arith.constant 2 : index
    %29 = memref.load %arg4[%c2_17] : memref<6xf32, #tpu.memory_space<smem>>
    %cst_18 = arith.constant 1.000000e+00 : f32
    %30 = arith.addf %cst_18, %29 : f32
    %31 = vector.broadcast %30 : f32 to vector<8x128xf32>
    %32 = arith.mulf %28, %31 : vector<8x128xf32>
    %c0_19 = arith.constant 0 : index
    %33 = memref.load %arg5[%c0_19] : memref<2xf32, #tpu.memory_space<smem>>
    %34 = vector.broadcast %33 : f32 to vector<8x128xf32>
    %35 = arith.addf %32, %34 : vector<8x128xf32>
    %c2_i32 = arith.constant 2 : i32
    %36 = tpu.dynamic_rotate %28 by %c2_i32 dim 0 : vector<8x128xf32>, i32 -> vector<8x128xf32>
    %c2_i32_20 = arith.constant 2 : i32
    %37 = vector.broadcast %c2_i32_20 : i32 to vector<8x128xi32>
    %38 = arith.cmpi sge, %0, %37 : vector<8x128xi32>
    %cst_21 = arith.constant 0.000000e+00 : f32
    %39 = vector.broadcast %cst_21 : f32 to vector<8x128xf32>
    %40 = arith.select %38, %36, %39 : vector<8x128xi1>, vector<8x128xf32>
    %c0_22 = arith.constant 0 : index
    %41 = memref.load %arg4[%c0_22] : memref<6xf32, #tpu.memory_space<smem>>
    %42 = vector.broadcast %41 : f32 to vector<8x128xf32>
    %43 = arith.mulf %42, %40 : vector<8x128xf32>
    %44 = arith.addf %35, %43 : vector<8x128xf32>
    %c1_i32 = arith.constant 1 : i32
    %45 = tpu.dynamic_rotate %28 by %c1_i32 dim 0 : vector<8x128xf32>, i32 -> vector<8x128xf32>
    %c1_i32_23 = arith.constant 1 : i32
    %46 = vector.broadcast %c1_i32_23 : i32 to vector<8x128xi32>
    %47 = arith.cmpi sge, %0, %46 : vector<8x128xi32>
    %cst_24 = arith.constant 0.000000e+00 : f32
    %48 = vector.broadcast %cst_24 : f32 to vector<8x128xf32>
    %49 = arith.select %47, %45, %48 : vector<8x128xi1>, vector<8x128xf32>
    %c1_25 = arith.constant 1 : index
    %50 = memref.load %arg4[%c1_25] : memref<6xf32, #tpu.memory_space<smem>>
    %51 = vector.broadcast %50 : f32 to vector<8x128xf32>
    %52 = arith.mulf %51, %49 : vector<8x128xf32>
    %53 = arith.addf %44, %52 : vector<8x128xf32>
    %c0_26 = arith.constant 0 : index
    %c0_27 = arith.constant 0 : index
    %c0_28 = arith.constant 0 : index
    %c0_29 = arith.constant 0 : index
    %54 = vector.load %arg8[%c0_26, %c0_27, %c0_28, %c0_29] : memref<1x4x8x128xf32, #tpu.memory_space<vmem>>, vector<1x1x8x128xf32>
    %55 = vector.shape_cast %54 : vector<1x1x8x128xf32> to vector<8x128xf32>
    %56 = vector.shape_cast %53 : vector<8x128xf32> to vector<1x1x8x128xf32>
    tpu.vector_store %arg8[%c0_26, %c0_27, %c0_28, %c0_29], %56 {strides = array<i32>} : memref<1x4x8x128xf32, #tpu.memory_space<vmem>>, vector<1x1x8x128xf32>,
    %c0_30 = arith.constant 0 : index
    %c0_31 = arith.constant 0 : index
    %c0_32 = arith.constant 0 : index
    %c0_33 = arith.constant 0 : index
    %57 = vector.load %arg2[%c0_30, %c0_31, %c0_32, %c0_33] : memref<1x4x8x128xf32, #tpu.memory_space<vmem>>, vector<1x1x8x128xf32>
    %58 = vector.shape_cast %57 : vector<1x1x8x128xf32> to vector<8x128xf32>
    %c4 = arith.constant 4 : index
    %59 = memref.load %arg3[%c4] : memref<16xf32, #tpu.memory_space<smem>>
    %60 = vector.broadcast %59 : f32 to vector<8x128xf32>
    %61 = arith.mulf %58, %60 : vector<8x128xf32>
    %c0_34 = arith.constant 0 : index
    %c1_35 = arith.constant 1 : index
    %c0_36 = arith.constant 0 : index
    %c0_37 = arith.constant 0 : index
    %62 = vector.load %arg2[%c0_34, %c1_35, %c0_36, %c0_37] : memref<1x4x8x128xf32, #tpu.memory_space<vmem>>, vector<1x1x8x128xf32>
    %63 = vector.shape_cast %62 : vector<1x1x8x128xf32> to vector<8x128xf32>
    %c5 = arith.constant 5 : index
    %64 = memref.load %arg3[%c5] : memref<16xf32, #tpu.memory_space<smem>>
    %65 = vector.broadcast %64 : f32 to vector<8x128xf32>
    %66 = arith.mulf %63, %65 : vector<8x128xf32>
    %67 = arith.addf %61, %66 : vector<8x128xf32>
    %c0_38 = arith.constant 0 : index
    %c2_39 = arith.constant 2 : index
    %c0_40 = arith.constant 0 : index
    %c0_41 = arith.constant 0 : index
    %68 = vector.load %arg2[%c0_38, %c2_39, %c0_40, %c0_41] : memref<1x4x8x128xf32, #tpu.memory_space<vmem>>, vector<1x1x8x128xf32>
    %69 = vector.shape_cast %68 : vector<1x1x8x128xf32> to vector<8x128xf32>
    %c6 = arith.constant 6 : index
    %70 = memref.load %arg3[%c6] : memref<16xf32, #tpu.memory_space<smem>>
    %71 = vector.broadcast %70 : f32 to vector<8x128xf32>
    %72 = arith.mulf %69, %71 : vector<8x128xf32>
    %73 = arith.addf %67, %72 : vector<8x128xf32>
    %c0_42 = arith.constant 0 : index
    %c3_43 = arith.constant 3 : index
    %c0_44 = arith.constant 0 : index
    %c0_45 = arith.constant 0 : index
    %74 = vector.load %arg2[%c0_42, %c3_43, %c0_44, %c0_45] : memref<1x4x8x128xf32, #tpu.memory_space<vmem>>, vector<1x1x8x128xf32>
    %75 = vector.shape_cast %74 : vector<1x1x8x128xf32> to vector<8x128xf32>
    %c7 = arith.constant 7 : index
    %76 = memref.load %arg3[%c7] : memref<16xf32, #tpu.memory_space<smem>>
    %77 = vector.broadcast %76 : f32 to vector<8x128xf32>
    %78 = arith.mulf %75, %77 : vector<8x128xf32>
    %79 = arith.addf %73, %78 : vector<8x128xf32>
    %cst_46 = arith.constant 0.000000e+00 : f32
    %80 = vector.broadcast %cst_46 : f32 to vector<8x128xf32>
    %81 = arith.cmpf oge, %79, %80 : vector<8x128xf32>
    %cst_47 = arith.constant 2.000000e-01 : f32
    %82 = vector.broadcast %cst_47 : f32 to vector<8x128xf32>
    %83 = arith.mulf %82, %79 : vector<8x128xf32>
    %84 = arith.select %81, %79, %83 : vector<8x128xi1>, vector<8x128xf32>
    %c5_48 = arith.constant 5 : index
    %85 = memref.load %arg4[%c5_48] : memref<6xf32, #tpu.memory_space<smem>>
    %cst_49 = arith.constant 1.000000e+00 : f32
    %86 = arith.addf %cst_49, %85 : f32
    %87 = vector.broadcast %86 : f32 to vector<8x128xf32>
    %88 = arith.mulf %84, %87 : vector<8x128xf32>
    %c1_50 = arith.constant 1 : index
    %89 = memref.load %arg5[%c1_50] : memref<2xf32, #tpu.memory_space<smem>>
    %90 = vector.broadcast %89 : f32 to vector<8x128xf32>
    %91 = arith.addf %88, %90 : vector<8x128xf32>
    %c2_i32_51 = arith.constant 2 : i32
    %92 = tpu.dynamic_rotate %84 by %c2_i32_51 dim 0 : vector<8x128xf32>, i32 -> vector<8x128xf32>
    %c2_i32_52 = arith.constant 2 : i32
    %93 = vector.broadcast %c2_i32_52 : i32 to vector<8x128xi32>
    %94 = arith.cmpi sge, %0, %93 : vector<8x128xi32>
    %cst_53 = arith.constant 0.000000e+00 : f32
    %95 = vector.broadcast %cst_53 : f32 to vector<8x128xf32>
    %96 = arith.select %94, %92, %95 : vector<8x128xi1>, vector<8x128xf32>
    %c3_54 = arith.constant 3 : index
    %97 = memref.load %arg4[%c3_54] : memref<6xf32, #tpu.memory_space<smem>>
    %98 = vector.broadcast %97 : f32 to vector<8x128xf32>
    %99 = arith.mulf %98, %96 : vector<8x128xf32>
    %100 = arith.addf %91, %99 : vector<8x128xf32>
    %c1_i32_55 = arith.constant 1 : i32
    %101 = tpu.dynamic_rotate %84 by %c1_i32_55 dim 0 : vector<8x128xf32>, i32 -> vector<8x128xf32>
    %c1_i32_56 = arith.constant 1 : i32
    %102 = vector.broadcast %c1_i32_56 : i32 to vector<8x128xi32>
    %103 = arith.cmpi sge, %0, %102 : vector<8x128xi32>
    %cst_57 = arith.constant 0.000000e+00 : f32
    %104 = vector.broadcast %cst_57 : f32 to vector<8x128xf32>
    %105 = arith.select %103, %101, %104 : vector<8x128xi1>, vector<8x128xf32>
    %c4_58 = arith.constant 4 : index
    %106 = memref.load %arg4[%c4_58] : memref<6xf32, #tpu.memory_space<smem>>
    %107 = vector.broadcast %106 : f32 to vector<8x128xf32>
    %108 = arith.mulf %107, %105 : vector<8x128xf32>
    %109 = arith.addf %100, %108 : vector<8x128xf32>
    %c0_59 = arith.constant 0 : index
    %c1_60 = arith.constant 1 : index
    %c0_61 = arith.constant 0 : index
    %c0_62 = arith.constant 0 : index
    %110 = vector.load %arg8[%c0_59, %c1_60, %c0_61, %c0_62] : memref<1x4x8x128xf32, #tpu.memory_space<vmem>>, vector<1x1x8x128xf32>
    %111 = vector.shape_cast %110 : vector<1x1x8x128xf32> to vector<8x128xf32>
    %112 = vector.shape_cast %109 : vector<8x128xf32> to vector<1x1x8x128xf32>
    tpu.vector_store %arg8[%c0_59, %c1_60, %c0_61, %c0_62], %112 {strides = array<i32>} : memref<1x4x8x128xf32, #tpu.memory_space<vmem>>, vector<1x1x8x128xf32>,
    %c0_63 = arith.constant 0 : index
    %c0_64 = arith.constant 0 : index
    %c0_65 = arith.constant 0 : index
    %c0_66 = arith.constant 0 : index
    %113 = vector.load %arg2[%c0_63, %c0_64, %c0_65, %c0_66] : memref<1x4x8x128xf32, #tpu.memory_space<vmem>>, vector<1x1x8x128xf32>
    %114 = vector.shape_cast %113 : vector<1x1x8x128xf32> to vector<8x128xf32>
    %c8 = arith.constant 8 : index
    %115 = memref.load %arg3[%c8] : memref<16xf32, #tpu.memory_space<smem>>
    %116 = vector.broadcast %115 : f32 to vector<8x128xf32>
    %117 = arith.mulf %114, %116 : vector<8x128xf32>
    %c0_67 = arith.constant 0 : index
    %c1_68 = arith.constant 1 : index
    %c0_69 = arith.constant 0 : index
    %c0_70 = arith.constant 0 : index
    %118 = vector.load %arg2[%c0_67, %c1_68, %c0_69, %c0_70] : memref<1x4x8x128xf32, #tpu.memory_space<vmem>>, vector<1x1x8x128xf32>
    %119 = vector.shape_cast %118 : vector<1x1x8x128xf32> to vector<8x128xf32>
    %c9 = arith.constant 9 : index
    %120 = memref.load %arg3[%c9] : memref<16xf32, #tpu.memory_space<smem>>
    %121 = vector.broadcast %120 : f32 to vector<8x128xf32>
    %122 = arith.mulf %119, %121 : vector<8x128xf32>
    %123 = arith.addf %117, %122 : vector<8x128xf32>
    %c0_71 = arith.constant 0 : index
    %c2_72 = arith.constant 2 : index
    %c0_73 = arith.constant 0 : index
    %c0_74 = arith.constant 0 : index
    %124 = vector.load %arg2[%c0_71, %c2_72, %c0_73, %c0_74] : memref<1x4x8x128xf32, #tpu.memory_space<vmem>>, vector<1x1x8x128xf32>
    %125 = vector.shape_cast %124 : vector<1x1x8x128xf32> to vector<8x128xf32>
    %c10 = arith.constant 10 : index
    %126 = memref.load %arg3[%c10] : memref<16xf32, #tpu.memory_space<smem>>
    %127 = vector.broadcast %126 : f32 to vector<8x128xf32>
    %128 = arith.mulf %125, %127 : vector<8x128xf32>
    %129 = arith.addf %123, %128 : vector<8x128xf32>
    %c0_75 = arith.constant 0 : index
    %c3_76 = arith.constant 3 : index
    %c0_77 = arith.constant 0 : index
    %c0_78 = arith.constant 0 : index
    %130 = vector.load %arg2[%c0_75, %c3_76, %c0_77, %c0_78] : memref<1x4x8x128xf32, #tpu.memory_space<vmem>>, vector<1x1x8x128xf32>
    %131 = vector.shape_cast %130 : vector<1x1x8x128xf32> to vector<8x128xf32>
    %c11 = arith.constant 11 : index
    %132 = memref.load %arg3[%c11] : memref<16xf32, #tpu.memory_space<smem>>
    %133 = vector.broadcast %132 : f32 to vector<8x128xf32>
    %134 = arith.mulf %131, %133 : vector<8x128xf32>
    %135 = arith.addf %129, %134 : vector<8x128xf32>
    %cst_79 = arith.constant 0.000000e+00 : f32
    %136 = vector.broadcast %cst_79 : f32 to vector<8x128xf32>
    %137 = arith.cmpf oge, %135, %136 : vector<8x128xf32>
    %cst_80 = arith.constant 2.000000e-01 : f32
    %138 = vector.broadcast %cst_80 : f32 to vector<8x128xf32>
    %139 = arith.mulf %138, %135 : vector<8x128xf32>
    %140 = arith.select %137, %135, %139 : vector<8x128xi1>, vector<8x128xf32>
    %c4_81 = arith.constant 4 : index
    %141 = memref.load %arg6[%c4_81] : memref<10xf32, #tpu.memory_space<smem>>
    %cst_82 = arith.constant 1.000000e+00 : f32
    %142 = arith.addf %cst_82, %141 : f32
    %143 = vector.broadcast %142 : f32 to vector<8x128xf32>
    %144 = arith.mulf %140, %143 : vector<8x128xf32>
    %c0_83 = arith.constant 0 : index
    %145 = memref.load %arg7[%c0_83] : memref<2xf32, #tpu.memory_space<smem>>
    %146 = vector.broadcast %145 : f32 to vector<8x128xf32>
    %147 = arith.addf %144, %146 : vector<8x128xf32>
    %c4_i32 = arith.constant 4 : i32
    %148 = tpu.dynamic_rotate %140 by %c4_i32 dim 0 : vector<8x128xf32>, i32 -> vector<8x128xf32>
    %c4_i32_84 = arith.constant 4 : i32
    %149 = vector.broadcast %c4_i32_84 : i32 to vector<8x128xi32>
    %150 = arith.cmpi sge, %0, %149 : vector<8x128xi32>
    %cst_85 = arith.constant 0.000000e+00 : f32
    %151 = vector.broadcast %cst_85 : f32 to vector<8x128xf32>
    %152 = arith.select %150, %148, %151 : vector<8x128xi1>, vector<8x128xf32>
    %c0_86 = arith.constant 0 : index
    %153 = memref.load %arg6[%c0_86] : memref<10xf32, #tpu.memory_space<smem>>
    %154 = vector.broadcast %153 : f32 to vector<8x128xf32>
    %155 = arith.mulf %154, %152 : vector<8x128xf32>
    %156 = arith.addf %147, %155 : vector<8x128xf32>
    %c3_i32 = arith.constant 3 : i32
    %157 = tpu.dynamic_rotate %140 by %c3_i32 dim 0 : vector<8x128xf32>, i32 -> vector<8x128xf32>
    %c3_i32_87 = arith.constant 3 : i32
    %158 = vector.broadcast %c3_i32_87 : i32 to vector<8x128xi32>
    %159 = arith.cmpi sge, %0, %158 : vector<8x128xi32>
    %cst_88 = arith.constant 0.000000e+00 : f32
    %160 = vector.broadcast %cst_88 : f32 to vector<8x128xf32>
    %161 = arith.select %159, %157, %160 : vector<8x128xi1>, vector<8x128xf32>
    %c1_89 = arith.constant 1 : index
    %162 = memref.load %arg6[%c1_89] : memref<10xf32, #tpu.memory_space<smem>>
    %163 = vector.broadcast %162 : f32 to vector<8x128xf32>
    %164 = arith.mulf %163, %161 : vector<8x128xf32>
    %165 = arith.addf %156, %164 : vector<8x128xf32>
    %c2_i32_90 = arith.constant 2 : i32
    %166 = tpu.dynamic_rotate %140 by %c2_i32_90 dim 0 : vector<8x128xf32>, i32 -> vector<8x128xf32>
    %c2_i32_91 = arith.constant 2 : i32
    %167 = vector.broadcast %c2_i32_91 : i32 to vector<8x128xi32>
    %168 = arith.cmpi sge, %0, %167 : vector<8x128xi32>
    %cst_92 = arith.constant 0.000000e+00 : f32
    %169 = vector.broadcast %cst_92 : f32 to vector<8x128xf32>
    %170 = arith.select %168, %166, %169 : vector<8x128xi1>, vector<8x128xf32>
    %c2_93 = arith.constant 2 : index
    %171 = memref.load %arg6[%c2_93] : memref<10xf32, #tpu.memory_space<smem>>
    %172 = vector.broadcast %171 : f32 to vector<8x128xf32>
    %173 = arith.mulf %172, %170 : vector<8x128xf32>
    %174 = arith.addf %165, %173 : vector<8x128xf32>
    %c1_i32_94 = arith.constant 1 : i32
    %175 = tpu.dynamic_rotate %140 by %c1_i32_94 dim 0 : vector<8x128xf32>, i32 -> vector<8x128xf32>
    %c1_i32_95 = arith.constant 1 : i32
    %176 = vector.broadcast %c1_i32_95 : i32 to vector<8x128xi32>
    %177 = arith.cmpi sge, %0, %176 : vector<8x128xi32>
    %cst_96 = arith.constant 0.000000e+00 : f32
    %178 = vector.broadcast %cst_96 : f32 to vector<8x128xf32>
    %179 = arith.select %177, %175, %178 : vector<8x128xi1>, vector<8x128xf32>
    %c3_97 = arith.constant 3 : index
    %180 = memref.load %arg6[%c3_97] : memref<10xf32, #tpu.memory_space<smem>>
    %181 = vector.broadcast %180 : f32 to vector<8x128xf32>
    %182 = arith.mulf %181, %179 : vector<8x128xf32>
    %183 = arith.addf %174, %182 : vector<8x128xf32>
    %c0_98 = arith.constant 0 : index
    %c2_99 = arith.constant 2 : index
    %c0_100 = arith.constant 0 : index
    %c0_101 = arith.constant 0 : index
    %184 = vector.load %arg8[%c0_98, %c2_99, %c0_100, %c0_101] : memref<1x4x8x128xf32, #tpu.memory_space<vmem>>, vector<1x1x8x128xf32>
    %185 = vector.shape_cast %184 : vector<1x1x8x128xf32> to vector<8x128xf32>
    %186 = vector.shape_cast %183 : vector<8x128xf32> to vector<1x1x8x128xf32>
    tpu.vector_store %arg8[%c0_98, %c2_99, %c0_100, %c0_101], %186 {strides = array<i32>} : memref<1x4x8x128xf32, #tpu.memory_space<vmem>>, vector<1x1x8x128xf32>,
    %c0_102 = arith.constant 0 : index
    %c0_103 = arith.constant 0 : index
    %c0_104 = arith.constant 0 : index
    %c0_105 = arith.constant 0 : index
    %187 = vector.load %arg2[%c0_102, %c0_103, %c0_104, %c0_105] : memref<1x4x8x128xf32, #tpu.memory_space<vmem>>, vector<1x1x8x128xf32>
    %188 = vector.shape_cast %187 : vector<1x1x8x128xf32> to vector<8x128xf32>
    %c12 = arith.constant 12 : index
    %189 = memref.load %arg3[%c12] : memref<16xf32, #tpu.memory_space<smem>>
    %190 = vector.broadcast %189 : f32 to vector<8x128xf32>
    %191 = arith.mulf %188, %190 : vector<8x128xf32>
    %c0_106 = arith.constant 0 : index
    %c1_107 = arith.constant 1 : index
    %c0_108 = arith.constant 0 : index
    %c0_109 = arith.constant 0 : index
    %192 = vector.load %arg2[%c0_106, %c1_107, %c0_108, %c0_109] : memref<1x4x8x128xf32, #tpu.memory_space<vmem>>, vector<1x1x8x128xf32>
    %193 = vector.shape_cast %192 : vector<1x1x8x128xf32> to vector<8x128xf32>
    %c13 = arith.constant 13 : index
    %194 = memref.load %arg3[%c13] : memref<16xf32, #tpu.memory_space<smem>>
    %195 = vector.broadcast %194 : f32 to vector<8x128xf32>
    %196 = arith.mulf %193, %195 : vector<8x128xf32>
    %197 = arith.addf %191, %196 : vector<8x128xf32>
    %c0_110 = arith.constant 0 : index
    %c2_111 = arith.constant 2 : index
    %c0_112 = arith.constant 0 : index
    %c0_113 = arith.constant 0 : index
    %198 = vector.load %arg2[%c0_110, %c2_111, %c0_112, %c0_113] : memref<1x4x8x128xf32, #tpu.memory_space<vmem>>, vector<1x1x8x128xf32>
    %199 = vector.shape_cast %198 : vector<1x1x8x128xf32> to vector<8x128xf32>
    %c14 = arith.constant 14 : index
    %200 = memref.load %arg3[%c14] : memref<16xf32, #tpu.memory_space<smem>>
    %201 = vector.broadcast %200 : f32 to vector<8x128xf32>
    %202 = arith.mulf %199, %201 : vector<8x128xf32>
    %203 = arith.addf %197, %202 : vector<8x128xf32>
    %c0_114 = arith.constant 0 : index
    %c3_115 = arith.constant 3 : index
    %c0_116 = arith.constant 0 : index
    %c0_117 = arith.constant 0 : index
    %204 = vector.load %arg2[%c0_114, %c3_115, %c0_116, %c0_117] : memref<1x4x8x128xf32, #tpu.memory_space<vmem>>, vector<1x1x8x128xf32>
    %205 = vector.shape_cast %204 : vector<1x1x8x128xf32> to vector<8x128xf32>
    %c15 = arith.constant 15 : index
    %206 = memref.load %arg3[%c15] : memref<16xf32, #tpu.memory_space<smem>>
    %207 = vector.broadcast %206 : f32 to vector<8x128xf32>
    %208 = arith.mulf %205, %207 : vector<8x128xf32>
    %209 = arith.addf %203, %208 : vector<8x128xf32>
    %cst_118 = arith.constant 0.000000e+00 : f32
    %210 = vector.broadcast %cst_118 : f32 to vector<8x128xf32>
    %211 = arith.cmpf oge, %209, %210 : vector<8x128xf32>
    %cst_119 = arith.constant 2.000000e-01 : f32
    %212 = vector.broadcast %cst_119 : f32 to vector<8x128xf32>
    %213 = arith.mulf %212, %209 : vector<8x128xf32>
    %214 = arith.select %211, %209, %213 : vector<8x128xi1>, vector<8x128xf32>
    %c9_120 = arith.constant 9 : index
    %215 = memref.load %arg6[%c9_120] : memref<10xf32, #tpu.memory_space<smem>>
    %cst_121 = arith.constant 1.000000e+00 : f32
    %216 = arith.addf %cst_121, %215 : f32
    %217 = vector.broadcast %216 : f32 to vector<8x128xf32>
    %218 = arith.mulf %214, %217 : vector<8x128xf32>
    %c1_122 = arith.constant 1 : index
    %219 = memref.load %arg7[%c1_122] : memref<2xf32, #tpu.memory_space<smem>>
    %220 = vector.broadcast %219 : f32 to vector<8x128xf32>
    %221 = arith.addf %218, %220 : vector<8x128xf32>
    %c4_i32_123 = arith.constant 4 : i32
    %222 = tpu.dynamic_rotate %214 by %c4_i32_123 dim 0 : vector<8x128xf32>, i32 -> vector<8x128xf32>
    %c4_i32_124 = arith.constant 4 : i32
    %223 = vector.broadcast %c4_i32_124 : i32 to vector<8x128xi32>
    %224 = arith.cmpi sge, %0, %223 : vector<8x128xi32>
    %cst_125 = arith.constant 0.000000e+00 : f32
    %225 = vector.broadcast %cst_125 : f32 to vector<8x128xf32>
    %226 = arith.select %224, %222, %225 : vector<8x128xi1>, vector<8x128xf32>
    %c5_126 = arith.constant 5 : index
    %227 = memref.load %arg6[%c5_126] : memref<10xf32, #tpu.memory_space<smem>>
    %228 = vector.broadcast %227 : f32 to vector<8x128xf32>
    %229 = arith.mulf %228, %226 : vector<8x128xf32>
    %230 = arith.addf %221, %229 : vector<8x128xf32>
    %c3_i32_127 = arith.constant 3 : i32
    %231 = tpu.dynamic_rotate %214 by %c3_i32_127 dim 0 : vector<8x128xf32>, i32 -> vector<8x128xf32>
    %c3_i32_128 = arith.constant 3 : i32
    %232 = vector.broadcast %c3_i32_128 : i32 to vector<8x128xi32>
    %233 = arith.cmpi sge, %0, %232 : vector<8x128xi32>
    %cst_129 = arith.constant 0.000000e+00 : f32
    %234 = vector.broadcast %cst_129 : f32 to vector<8x128xf32>
    %235 = arith.select %233, %231, %234 : vector<8x128xi1>, vector<8x128xf32>
    %c6_130 = arith.constant 6 : index
    %236 = memref.load %arg6[%c6_130] : memref<10xf32, #tpu.memory_space<smem>>
    %237 = vector.broadcast %236 : f32 to vector<8x128xf32>
    %238 = arith.mulf %237, %235 : vector<8x128xf32>
    %239 = arith.addf %230, %238 : vector<8x128xf32>
    %c2_i32_131 = arith.constant 2 : i32
    %240 = tpu.dynamic_rotate %214 by %c2_i32_131 dim 0 : vector<8x128xf32>, i32 -> vector<8x128xf32>
    %c2_i32_132 = arith.constant 2 : i32
    %241 = vector.broadcast %c2_i32_132 : i32 to vector<8x128xi32>
    %242 = arith.cmpi sge, %0, %241 : vector<8x128xi32>
    %cst_133 = arith.constant 0.000000e+00 : f32
    %243 = vector.broadcast %cst_133 : f32 to vector<8x128xf32>
    %244 = arith.select %242, %240, %243 : vector<8x128xi1>, vector<8x128xf32>
    %c7_134 = arith.constant 7 : index
    %245 = memref.load %arg6[%c7_134] : memref<10xf32, #tpu.memory_space<smem>>
    %246 = vector.broadcast %245 : f32 to vector<8x128xf32>
    %247 = arith.mulf %246, %244 : vector<8x128xf32>
    %248 = arith.addf %239, %247 : vector<8x128xf32>
    %c1_i32_135 = arith.constant 1 : i32
    %249 = tpu.dynamic_rotate %214 by %c1_i32_135 dim 0 : vector<8x128xf32>, i32 -> vector<8x128xf32>
    %c1_i32_136 = arith.constant 1 : i32
    %250 = vector.broadcast %c1_i32_136 : i32 to vector<8x128xi32>
    %251 = arith.cmpi sge, %0, %250 : vector<8x128xi32>
    %cst_137 = arith.constant 0.000000e+00 : f32
    %252 = vector.broadcast %cst_137 : f32 to vector<8x128xf32>
    %253 = arith.select %251, %249, %252 : vector<8x128xi1>, vector<8x128xf32>
    %c8_138 = arith.constant 8 : index
    %254 = memref.load %arg6[%c8_138] : memref<10xf32, #tpu.memory_space<smem>>
    %255 = vector.broadcast %254 : f32 to vector<8x128xf32>
    %256 = arith.mulf %255, %253 : vector<8x128xf32>
    %257 = arith.addf %248, %256 : vector<8x128xf32>
    %c0_139 = arith.constant 0 : index
    %c3_140 = arith.constant 3 : index
    %c0_141 = arith.constant 0 : index
    %c0_142 = arith.constant 0 : index
    %258 = vector.load %arg8[%c0_139, %c3_140, %c0_141, %c0_142] : memref<1x4x8x128xf32, #tpu.memory_space<vmem>>, vector<1x1x8x128xf32>
    %259 = vector.shape_cast %258 : vector<1x1x8x128xf32> to vector<8x128xf32>
    %260 = vector.shape_cast %257 : vector<8x128xf32> to vector<1x1x8x128xf32>
    tpu.vector_store %arg8[%c0_139, %c3_140, %c0_141, %c0_142], %260 {strides = array<i32>} : memref<1x4x8x128xf32, #tpu.memory_space<vmem>>, vector<1x1x8x128xf32>,
    return
  }
  func.func @transform_0(%arg0: i32, %arg1: i32) -> (i32, i32, i32, i32) {
    %c0_i32 = arith.constant 0 : i32
    %c0_i32_0 = arith.constant 0 : i32
    %c0_i32_1 = arith.constant 0 : i32
    return %arg0, %c0_i32, %c0_i32_0, %arg1 : i32, i32, i32, i32
  }
  func.func @transform_1(%arg0: i32, %arg1: i32) -> i32 {
    %c0_i32 = arith.constant 0 : i32
    %c0_i32_0 = arith.constant 0 : i32
    return %c0_i32 : i32
  }
  func.func @transform_2(%arg0: i32, %arg1: i32) -> i32 {
    %c0_i32 = arith.constant 0 : i32
    %c0_i32_0 = arith.constant 0 : i32
    return %c0_i32 : i32
  }
  func.func @transform_3(%arg0: i32, %arg1: i32) -> i32 {
    %c0_i32 = arith.constant 0 : i32
    %c0_i32_0 = arith.constant 0 : i32
    return %c0_i32 : i32
  }
  func.func @transform_4(%arg0: i32, %arg1: i32) -> i32 {
    %c0_i32 = arith.constant 0 : i32
    %c0_i32_0 = arith.constant 0 : i32
    return %c0_i32 : i32
  }
  func.func @transform_5(%arg0: i32, %arg1: i32) -> i32 {
    %c0_i32 = arith.constant 0 : i32
    %c0_i32_0 = arith.constant 0 : i32
    return %c0_i32 : i32
  }
  func.func @transform_6(%arg0: i32, %arg1: i32) -> (i32, i32, i32, i32) {
    %c0_i32 = arith.constant 0 : i32
    %c0_i32_0 = arith.constant 0 : i32
    %c0_i32_1 = arith.constant 0 : i32
    return %arg0, %c0_i32, %c0_i32_0, %arg1 : i32, i32, i32, i32
  }
}

</mosaic_0001>

<bundles_post_ra>
// kernel: tpu_custom_call.1
= control target key start
LH: loop header
LB: loop body
LE: loop exit
PB: predicated region body
PF: predicated region fallthrough
CT: control target
= control target key end

     0   :  { %s1564_s0 = inlined_call_operand.hbm [shape: f32[2,4,8,128], index: 0, kind: input, shape index: {}]   ;;  %s1565_s1 = inlined_call_operand.vmem [shape: f32[16], index: 1, kind: input, shape index: {}]   ;;  %s1566_s2 = inlined_call_operand.vmem [shape: f32[6], index: 2, kind: input, shape index: {}]   ;;  %s1567_s3 = inlined_call_operand.vmem [shape: f32[2], index: 3, kind: input, shape index: {}]   ;;  %s1568_s4 = inlined_call_operand.vmem [shape: f32[10], index: 4, kind: input, shape index: {}]   ;;  %s1569_s5 = inlined_call_operand.vmem [shape: f32[2], index: 5, kind: input, shape index: {}]   ;;  %s1570_s6 = inlined_call_operand.hbm [shape: f32[2,4,8,128], index: 6, kind: output, shape index: {}]  }
   0x1   :  { %1576 = sst [smem:[#allocation19_spill]] %s1564_s0 }
   0x2   :  { %1577 = sst [smem:[#allocation20_spill]] %s1565_s1 }
   0x3   :  { %1578 = sst [smem:[#allocation21_spill]] %s1566_s2 }
   0x4   :  { %1579 = sst [smem:[#allocation22_spill]] %s1567_s3 }
   0x5   :  { %11 = vsyncpa [#allocation3], 0 }
   0x6   :  { %13 = vsyncpa [#allocation3 + $0x1], 0 }
   0x7   :  { %14 = vsyncpa [#allocation5], 0 }
   0x8   :  { %15 = vsyncpa [#allocation8], 0 }
   0x9   :  { %16 = vsyncpa [#allocation11], 0 }
   0xa   :  { %17 = vsyncpa [#allocation4], 0 }
   0xb   :  { %19 = vsyncpa [#allocation4 + $0x1], 0  ;;  %s1142_s21 = smov 0   ;;  %s1144_s22 = smov 0  }
   0xc   :  { %s1146_s23 = smov 0   ;;  %s1148_s24 = smov 0  }
   0xd   :  { %s1150_s25 = smov 0   ;;  %s1152_s26 = smov 0  }
   0xe LB: > { %s1580_s2 = sld [smem:[#allocation21_spill]]  ;;  %s705_s30 = sadd.s32 4294967295, %s1094_s26   ;;  %s1094_s26 = sphi %s1152_s26, %s25_s26   ;;  %s1090_s25 = sphi %s1150_s25, %s1604_s25   ;;  %s1086_s24 = sphi %s1148_s24, %s1603_s24   ;;  %s1082_s23 = sphi %s1146_s23, %s1602_s23   ;;  %s1078_s22 = sphi %s1144_s22, %s1601_s22   ;;  %s1074_s21 = sphi %s1142_s21, %s1600_s21  }
   0xf   : > { %p707_p0 = scmp.ge.s32.totalorder %s1094_s26, 1  ;;  %p1179_p1 = scmp.eq.s32.totalorder %s705_s30, 0 }
  0x10   : > { %p203_p2 = scmp.lt.s32.totalorder %s1094_s26, 3  ;;  %s249_s11 = sshll.u32 %s1568_s4, 4  ;;  %s250_s11 = int_to_ptr.vmem [resolvable:$true] %s249_s11 }
  0x11   : > { %s1581_s7 = scalar_select %p1179_p1, 1, 0 }
  0x12   : > { %p1184_p3 = pnand %p707_p0, %p203_p2  ;;  %s1583_s1 = sld [smem:[#allocation20_spill]] }
  0x13   : > { %s1585_s3 = sld [smem:[#allocation22_spill]] }
  0x14   : > { %s227_s29 = sshll.u32 %s1580_s2, 4  ;;  %p802_p5 = pneg %p1184_p3  ;;  %s228_s29 = int_to_ptr.vmem [resolvable:$true] %s227_s29 }
  0x15   : > { %s1582_s8 = scalar_select %p1184_p3, 1, 0 }
  0x16   : > { %p1199_p6 = pnand %p802_p5, %p1179_p1  ;;  %s895_s19 = scalar_lea.vmem %s228_s29, 16 }
  0x17   : > { %p896_p7 = scmp.ne.s32.totalorder %s228_s29, %s895_s19  ;;  %p903_p11 = scmp.lt.s32.totalorder %s228_s29, %s228_s29 }
  0x18   : > { %s216_s14 = sshll.u32 %s1583_s1, 4  ;;  %p1210_p8 = pneg %p1199_p6  ;;  %s1203_s14 = int_to_ptr.vmem [resolvable:$true] %s216_s14 }
  0x19   : > { %s238_s18 = sshll.u32 %s1585_s3, 4  ;;  %p904_p12 = scmp.lt.s32.totalorder %s895_s19, %s895_s19  ;;  %s239_s18 = int_to_ptr.vmem [resolvable:$true] %s238_s18 }
  0x1a   : > { %p898_p9 = pnand %p1210_p8, %p896_p7 }
  0x1b   : > { %p905_p13 = por %p904_p12, %p903_p11 }
  0x1c   : > { %p899_p10 = pneg %p898_p9 }
  0x1e   : > { %p906_p0 = pnand %p905_p13, %p899_p10 }
  0x20   : > { %909 = shalt.err (!%p906_p0)
}
  0x21   : > { %s1096_s27 = smov [#allocation7]   ;;  %s910_s28 = scalar_lea.vmem %s250_s11, 16 }
  0x22   : > { %808 = dma.vmem_to_smem (!%p1199_p6), %s228_s29, 16, %s1096_s27, [#allocation8]  }
  0x23   : > { %p911_p2 = scmp.ne.s32.totalorder %s250_s11, %s910_s28  ;;  %p918_p3 = scmp.lt.s32.totalorder %s250_s11, %s250_s11 }
  0x24   : > { %p919_p1 = scmp.lt.s32.totalorder %s910_s28, %s910_s28 }
  0x25   : > { %p913_p5 = pnand %p911_p2, %p1210_p8 }
  0x26   : > { %p920_p7 = por %p919_p1, %p918_p3 }
  0x27   : > { %p914_p4 = pneg %p913_p5 }
  0x29   : > { %p921_p9 = pnand %p920_p7, %p914_p4 }
  0x2b   : > { %924 = shalt.err (!%p921_p9)
}
  0x2c   : > { %s1097_s9 = smov [#allocation10]   ;;  %s925_s10 = scalar_lea.vmem %s1203_s14, 16 }
  0x2d   : > { %814 = dma.vmem_to_smem (!%p1199_p6), %s250_s11, 16, %s1097_s9, [#allocation11]  }
  0x2e   : > { %p926_p10 = scmp.ne.s32.totalorder %s1203_s14, %s925_s10  ;;  %p933_p13 = scmp.lt.s32.totalorder %s1203_s14, %s1203_s14 }
  0x2f   : > { %p934_p0 = scmp.lt.s32.totalorder %s925_s10, %s925_s10 }
  0x30   : > { %p928_p11 = pnand %p926_p10, %p1210_p8 }
  0x31   : > { %p935_p2 = por %p934_p0, %p933_p13 }
  0x32   : > { %p929_p12 = pneg %p928_p11 }
  0x34   : > { %p936_p1 = pnand %p935_p2, %p929_p12 }
  0x36   : > { %939 = shalt.err (!%p936_p1)
}
  0x37   : > { %s1098_s29 = smov [#allocation6]   ;;  %s940_s11 = scalar_lea.vmem %s239_s18, 16 }
  0x38   : > { %805 = dma.vmem_to_smem (!%p1199_p6), %s1203_s14, 16, %s1098_s29, [#allocation5]  }
  0x39   : > { %p941_p3 = scmp.ne.s32.totalorder %s239_s18, %s940_s11  ;;  %p948_p7 = scmp.lt.s32.totalorder %s239_s18, %s239_s18 }
  0x3a   : > { %p949_p9 = scmp.lt.s32.totalorder %s940_s11, %s940_s11 }
  0x3b   : > { %p943_p4 = pnand %p941_p3, %p1210_p8 }
  0x3c   : > { %p950_p10 = por %p949_p9, %p948_p7 }
  0x3d   : > { %p944_p5 = pneg %p943_p4 }
  0x3f   : > { %p951_p11 = pnand %p950_p10, %p944_p5 }
  0x41   : > { %954 = shalt.err (!%p951_p11)
}
  0x42   : > { %s1099_s16 = smov [#allocation9]   ;;  %s260_s19 = sshll.u32 %s1569_s5, 4  ;;  %s261_s19 = int_to_ptr.vmem [resolvable:$true] %s260_s19 }
  0x43   : > { %811 = dma.vmem_to_smem (!%p1199_p6), %s239_s18, 16, %s1099_s16, [#allocation8]  }
  0x44   : > { %s955_s27 = scalar_lea.vmem %s261_s19, 16  ;;  %p963_p2 = scmp.lt.s32.totalorder %s261_s19, %s261_s19 }
  0x45   : > { %p956_p12 = scmp.ne.s32.totalorder %s261_s19, %s955_s27  ;;  %p964_p1 = scmp.lt.s32.totalorder %s955_s27, %s955_s27 }
  0x47   : > { %p958_p13 = pnand %p956_p12, %p1210_p8  ;;  %p965_p3 = por %p964_p1, %p963_p2 }
  0x49   : > { %p959_p0 = pneg %p958_p13 }
  0x4b   : > { %p966_p4 = pnand %p965_p3, %p959_p0 }
  0x4d   : > { %969 = shalt.err (!%p966_p4)
}
  0x4e   : > { %s1100_s28 = smov [#allocation12]   ;;  %s706_s18 = sadd.s32 4294967294, %s1094_s26  }
  0x4f   : > { %817 = dma.vmem_to_smem (!%p1199_p6), %s261_s19, 16, %s1100_s28, [#allocation11]  }
  0x50   : > { %s37_s20 = sadd.s32 1, %s1090_s25  ;;  %s46_s9 = sadd.s32 1, %s1082_s23 }
  0x51   : > { %p39_p8 = scmp.ge.s32.totalorder %s37_s20, 2  ;;  %p53_p5 = scmp.ne.s32.totalorder %s1082_s23, %s1078_s22 }
  0x52   : > { %p54_p7 = scmp.eq.s32.totalorder %s1094_s26, 0  ;;  %p59_p9 = scmp.ne.s32.totalorder %s1078_s22, %s1074_s21 }
  0x53   : > { %s1606_s20 = smov (%p39_p8, %s37_s20), 0  ;;  %p1588_p11 = scmp.ne.s32.totalorder %s1581_s7, 0 }
  0x54   : > { %p1256_p10 = por %p54_p7, %p53_p5  ;;  %s41_s29 = ssub.s32 %s1090_s25, %s1606_s20 }
  0x55   : > { %p1262_p6 = por %p1588_p11, %p59_p9  ;;  %p190_p12 = scmp.eq.s32.totalorder %s705_s30, 1 }
  0x56   : > { %p44_p13 = scmp.eq.s32.totalorder %s41_s29, 0  ;;  %p196_p0 = scmp.eq.s32.totalorder %s706_s18, 1 }
  0x57   : > { %p1270_p2 = por %p190_p12, %p53_p5  ;;  %p831_p1 = scmp.lt.s32.totalorder %s1094_s26, 2 }
  0x58   : > { %s1276_s13 = scalar_select %p44_p13, %s1082_s23, %s46_s9  }
  0x59   : > { %s1590_s12 = scalar_select %p1270_p2, 1, 0 }
  0x5a   : > { %p1278_p3 = por %p196_p0, %p59_p9  ;;  %s271_s16 = sand.u32 1, %s1082_s23  }
  0x5b   : > { %s714_s14 = sshll.u32 %s271_s16, 5  ;;  %s776_s17 = sshll.u32 %s1090_s25, 9 }
  0x5c   : > { %s1591_s11 = scalar_select %p1278_p3, 1, 0 }
  0x5d   : > { %s1592_s0 = sld [smem:[#allocation19_spill]]  ;;  %s275_s28 = scalar_lea.vmem [#allocation2], %s714_s14 }
  0x5e   : > { %s283_s18 = sshll.u32 %s275_s28, 4  ;;  %p1293_p4 = pnand %p831_p1, %p1256_p10  ;;  %s1289_s18 = int_to_ptr.vmem [resolvable:$true] %s283_s18 }
  0x5f   : > { %s1297_s29 = scalar_lea.sflag [#allocation3], %s271_s16 }
  0x60   : > { %p972_p5 = pneg %p1293_p4 }
  0x63   : > { %s1287_s30 = scalar_lea.hbm %s1592_s0, %s776_s17  ;;  %s975_s15 = scalar_lea.hbm %s1592_s0, 1024 }
  0x64   : > { %s970_s19 = scalar_lea.hbm %s1287_s30, 512  ;;  %p976_p10 = scmp.lt.u32.totalorder %s1287_s30, %s1592_s0 }
  0x65   : > { %p971_p8 = scmp.ne.s32.totalorder %s1287_s30, %s970_s19  ;;  %p977_p11 = scmp.lt.u32.totalorder %s975_s15, %s970_s19 }
  0x66   : > { %p979_p13 = scmp.lt.u32.totalorder %s970_s19, %s1287_s30 }
  0x67   : > { %p973_p7 = pnand %p972_p5, %p971_p8  ;;  %p978_p12 = por %p977_p11, %p976_p10 }
  0x69   : > { %p974_p9 = pneg %p973_p7  ;;  %p980_p0 = por %p979_p13, %p978_p12 }
  0x6b   : > { %p981_p1 = pnand %p980_p0, %p974_p9 }
  0x6d   : > { %984 = shalt.err (!%p981_p1)
}
  0x6e   : > { %s985_s16 = scalar_lea.vmem %s1289_s18, 512  ;;  %s1101_s14 = smov [#allocation2]  }
  0x6f   : > { %p986_p8 = scmp.ne.s32.totalorder %s1289_s18, %s985_s16  ;;  %s990_s17 = sshll.u32 %s1101_s14, 4  ;;  %s991_s17 = int_to_ptr.vmem [resolvable:$false] %s990_s17 }
  0x70   : > { %s992_s27 = scalar_lea.vmem %s991_s17, 1024  ;;  %p993_p2 = scmp.lt.s32.totalorder %s1289_s18, %s991_s17 }
  0x71   : > { %p988_p7 = pnand %p986_p8, %p972_p5  ;;  %p994_p10 = scmp.lt.s32.totalorder %s992_s27, %s985_s16 }
  0x73   : > { %p989_p3 = pneg %p988_p7  ;;  %p995_p11 = por %p994_p10, %p993_p2 }
  0x75   : > { %p996_p12 = pnand %p995_p11, %p989_p3 }
  0x77   : > { %999 = shalt.err (!%p996_p12)
}
  0x78   : > { %s1102_s19 = smov 128   ;;  %s1103_s15 = smov 8  }
  0x79   : > { %821 = dma.hbm_to_vmem [thread:$0]  (!%p1293_p4), %s1287_s30, 512, %s1289_s18, %s1297_s29, %s1102_s19, %s1102_s19, %s1103_s15  }
  0x7a   : > { %p1594_p5 = scmp.ne.s32.totalorder %s1582_s8, 0 }
  0x7b   : > { %s1328_s28 = sand.u32 (!%p1594_p5), 1, %s1078_s22  }
  0x7c   : > { %295 = sbr.rel (%p1594_p5) target bundleno = 208 (0xd0), region = 44  ;;  %s1575_s16 = sshll.u32 (!%p1594_p5), %s1328_s28, 5 }
  0x7d   : > { %s298_s14 = scalar_lea.sflag (!%p1594_p5), [#allocation3], %s1328_s28  ;;  %s1334_s17 = scalar_lea.vmem (!%p1594_p5), [#allocation2], %s1575_s16 }
  0x83   : > { %1053 = dma.done.wait (%p1262_p6), %s298_s14, 512  }
  0x84   : > { %1055 = vsyncadd (%p1262_p6), %s298_s14, 4294966784  ;;  %p1595_p2 = scmp.ne.s32.totalorder %s1581_s7, 0 }
  0x86   : > { %1057 = dma.done.wait (%p1595_p2), [#allocation5], 16  }
  0x87   : > { %1059 = vsyncadd (%p1595_p2), [#allocation5], 4294967280 }
  0x88   : > { %1061 = dma.done.wait (%p1595_p2), [#allocation8], 32  }
  0x89   : > { %1063 = vsyncadd (%p1595_p2), [#allocation8], 4294967264 }
  0x8a   : > { %1065 = dma.done.wait (%p1595_p2), [#allocation11], 32  }
  0x8b   : > { %1067 = vsyncadd (%p1595_p2), [#allocation11], 4294967264 }
  0x8c   : > { %326 = sfence }
  0x8d   : > { %s354_s8 = sld [smem:[#allocation6]]  ;;  %s726_s10 = sld [smem:[#allocation6 + $0x1]]  ;;  %v351_v0 = vlaneseq  ;;  %v1363_v1 = vld [vmem:[%s1334_s17] sm:$0xff]  ;;  %v1371_v4 = vld [vmem:[%s1334_s17 + $0x8] sm:$0xff]  ;;  %v1374_v6 = vld [vmem:[%s1334_s17 + $0x10] sm:$0xff] }
  0x8e   : > { %s728_s30 = sld [smem:[#allocation6 + $0x2]]  ;;  %s730_s18 = sld [smem:[#allocation6 + $0x3]]  ;;  %v1388_v12 = vld [vmem:[%s1334_s17 + $0x18] sm:$0xff] }
  0x8f   : > { %s1352_s9 = sld [smem:[#allocation7 + $0x2]]  ;;  %s1354_s29 = sld [smem:[#allocation9]]  ;;  %v1385_v11 = vshrl.u32 %v351_v0, 7 }
  0x90   : > { %s1356_s27 = sld [smem:[#allocation7]]  ;;  %s1358_s19 = sld [smem:[#allocation7 + $0x1]] }
  0x91   : > { %s1360_s7 = sld [smem:[#allocation6 + $0x4]]  ;;  %s1365_s15 = sld [smem:[#allocation6 + $0x5]]  ;;  %vm386_vm0 = vcmp.ge.s32.totalorder %v1385_v11, 2  ;;  %vm393_vm1 = vcmp.ge.s32.totalorder %v1385_v11, 1  ;;  %vm473_vm3 = vcmp.ge.s32.totalorder %v1385_v11, 4  ;;  %vm480_vm4 = vcmp.ge.s32.totalorder %v1385_v11, 3 }
  0x92   : > { %s1367_s14 = sld [smem:[#allocation6 + $0x6]]  ;;  %s1376_s16 = sld [smem:[#allocation6 + $0x7]] }
  0x93   : > { %v355_v2 = vstv %s354_s8  ;;  %v360_v5 = vstv %s726_s10  ;;  %s1378_s0 = sld [smem:[#allocation7 + $0x5]]  ;;  %s1383_s1 = sld [smem:[#allocation9 + $0x1]] }
  0x94   : > { %v356_v3 = vmul.f32 %v355_v2, %v1363_v1  ;;  %v366_v7 = vstv %s728_s30  ;;  %v361_v8 = vmul.f32 %v1371_v4, %v360_v5  ;;  %v372_v10 = vstv %s730_s18  ;;  %s1390_s10 = sld [smem:[#allocation7 + $0x3]]  ;;  %s1392_s30 = sld [smem:[#allocation7 + $0x4]] }
  0x95   : > { %v367_v9 = vmul.f32 %v1374_v6, %v366_v7  ;;  %s379_s8 = sadd.f32 1.0, %s1352_s9  ;;  %v373_v14 = vmul.f32 %v1388_v12, %v372_v10  ;;  %s1395_s2 = sld [smem:[#allocation6 + $0x8]]  ;;  %v383_v15 = vstv %s1354_s29 }
  0x96   : > { %v362_v13 = vadd.f32 %v361_v8, %v356_v3  ;;  %s1397_s18 = sld [smem:[#allocation6 + $0x9]]  ;;  %s1403_s17 = sld [smem:[#allocation6 + $0xa]]  ;;  %v389_v21 = vstv %s1356_s27  ;;  %v396_v27 = vstv %s1358_s19 }
  0x97   : > { %v402_v16 = vstv %s1360_s7  ;;  %s1405_s9 = sld [smem:[#allocation6 + $0xb]]  ;;  %v406_v19 = vstv %s1365_s15  ;;  %s1410_s3 = sld [smem:[#allocation10 + $0x4]]  ;;  %v380_v26 = vstv %s379_s8 }
  0x98   : > { %v368_v17 = vadd.f32 %v367_v9, %v362_v13  ;;  %v403_v18 = vmul.f32 %v402_v16, %v1363_v1  ;;  %v411_v20 = vstv %s1367_s14  ;;  %s1412_s29 = sld [smem:[#allocation12]]  ;;  %v407_v22 = vmul.f32 %v1371_v4, %v406_v19  ;;  %s1423_s14 = sld [smem:[#allocation10 + $0x1]] }
  0x99   : > { %v412_v23 = vmul.f32 %v1374_v6, %v411_v20  ;;  %v416_v24 = vstv %s1376_s16  ;;  %s423_s7 = sadd.f32 1.0, %s1378_s0  ;;  %s1421_s15 = sld [smem:[#allocation10]]  ;;  %v427_v31 = vstv %s1383_s1 }
  0x9a   : > { %v374_v25 = vadd.f32 %v373_v14, %v368_v17  ;;  %v417_v28 = vmul.f32 %v1388_v12, %v416_v24  ;;  %v408_v29 = vadd.f32 %v407_v22, %v403_v18  ;;  %v432_v32 = vstv %s1390_s10  ;;  %s1427_s16 = sld [smem:[#allocation10 + $0x2]]  ;;  %s1429_s0 = sld [smem:[#allocation6 + $0xc]] }
  0x9b   : > { %v424_v30 = vstv %s423_s7  ;;  %v445_v34 = vstv %s1395_s2  ;;  %s1436_s27 = sld [smem:[#allocation6 + $0xd]]  ;;  %v438_v41 = vstv %s1392_s30  ;;  %s1442_s2 = sld [smem:[#allocation6 + $0xe]] }
  0x9c   : > { %vm375_vm2 = vcmp.ge.f32.partialorder %v374_v25, 0.0  ;;  %v376_v33 = vmul.f32 0.2, %v374_v25  ;;  %v449_v35 = vstv %s1397_s18  ;;  %v413_v36 = vadd.f32 %v412_v23, %v408_v29  ;;  %s1459_s19 = sld [smem:[#allocation10 + $0x3]]  ;;  %s1462_s8 = sld [smem:[#allocation10 + $0x9]] }
  0x9d   : > { %v446_v37 = vmul.f32 %v445_v34, %v1363_v1  ;;  %v450_v38 = vmul.f32 %v1371_v4, %v449_v35  ;;  %v454_v39 = vstv %s1403_s17  ;;  %v459_v43 = vstv %s1405_s9  ;;  %s466_s1 = sadd.f32 1.0, %s1410_s3  ;;  %s1452_s3 = sld [smem:[#allocation6 + $0xf]] }
  0x9e   : > { %v377_v40 = vsel %vm375_vm2, %v374_v25, %v376_v33  ;;  %v455_v42 = vmul.f32 %v1374_v6, %v454_v39  ;;  %v418_v47 = vadd.f32 %v417_v28, %v413_v36  ;;  %v460_v49 = vmul.f32 %v1388_v12, %v459_v43  ;;  %s1596_s10 = sshll.u32 %s1328_s28, 5  ;;  %s1477_s18 = sld [smem:[#allocation12 + $0x1]] }
  0x9f   : > { %v381_v44 = vmul.f32 %v380_v26, %v377_v40  ;;  %v385_v45 = vrot.slane %v377_v40, 6  ;;  %v392_v46 = vrot.slane %v377_v40, 7  ;;  %v451_v48 = vadd.f32 %v450_v38, %v446_v37  ;;  %s1472_s30 = scalar_lea.vmem [#allocation13], %s1596_s10  ;;  %s1479_s17 = sld [smem:[#allocation10 + $0x5]] }
  0xa0   : > { %v467_v50 = vstv %s466_s1  ;;  %v470_v51 = vstv %s1412_s29  ;;  %vm419_vm5 = vcmp.ge.f32.partialorder %v418_v47, 0.0  ;;  %v420_v57 = vmul.f32 0.2, %v418_v47  ;;  %s1487_s9 = sld [smem:[#allocation10 + $0x6]]  ;;  %s768_s7 = sld [smem:[#allocation10 + $0x7]] }
  0xa1   : > { %v384_v52 = vadd.f32 %v383_v15, %v381_v44  ;;  %v387_v53 = vsel %vm386_vm0, %v385_v45, 0.0  ;;  %v394_v54 = vsel %vm393_vm1, %v392_v46, 0.0  ;;  %v456_v58 = vadd.f32 %v455_v42, %v451_v48  ;;  %p1597_p3 = scmp.ne.s32.totalorder %s1590_s12, 0 }
  0xa2   : > { %v390_v55 = vmul.f32 %v389_v21, %v387_v53  ;;  %v397_v56 = vmul.f32 %v396_v27, %v394_v54  ;;  %v476_v59 = vstv %s1421_s15  ;;  %v483_v60 = vstv %s1423_s14  ;;  %s523_s29 = sadd.f32 1.0, %s1462_s8  ;;  %s769_s15 = sld [smem:[#allocation10 + $0x8]] }
  0xa3   : > { %v489_v61 = vstv %s1427_s16  ;;  %v502_v62 = vstv %s1429_s0  ;;  %v421_v0 = vsel %vm419_vm5, %v418_v47, %v420_v57  ;;  %v461_v2 = vadd.f32 %v460_v49, %v456_v58  ;;  %s570_s14 = sshll.u32 %s1472_s30, 4  ;;  %s777_s16 = sshll.u32 %s1086_s24, 9  ;;  %s1509_s14 = int_to_ptr.vmem [resolvable:$true] %s570_s14 }
  0xa4   : > { %v391_v63 = vadd.f32 %v390_v55, %v384_v52  ;;  %v503_v3 = vmul.f32 %v502_v62, %v1363_v1  ;;  %v425_v5 = vmul.f32 %v424_v30, %v421_v0  ;;  %v429_v7 = vrot.slane %v421_v0, 6  ;;  %s1514_s1 = scalar_lea.hbm %s1570_s6, %s777_s16  ;;  %s1104_s24 = smov [#allocation13]  }
  0xa5   : > { %v435_v8 = vrot.slane %v421_v0, 7  ;;  %v506_v9 = vstv %s1436_s27  ;;  %vm462_vm6 = vcmp.ge.f32.partialorder %v461_v2, 0.0  ;;  %v463_v13 = vmul.f32 0.2, %v461_v2 }
  0xa6   : > { %v398_v10 = vadd.f32 %v397_v56, %v391_v63  ;;  %v507_v14 = vmul.f32 %v1371_v4, %v506_v9  ;;  %v428_v15 = vadd.f32 %v427_v31, %v425_v5  ;;  %v430_v16 = vsel %vm386_vm0, %v429_v7, 0.0 }
  0xa7   : > { %v436_v1 = vsel %vm393_vm1, %v435_v8, 0.0  ;;  %v511_v17 = vstv %s1442_s2  ;;  %v433_v18 = vmul.f32 %v432_v32, %v430_v16  ;;  %v464_v20 = vsel %vm462_vm6, %v461_v2, %v463_v13  ;;  %s556_s2 = scalar_lea.sflag [#allocation4], %s1328_s28 }
  0xa8   : > { %399 = vst [vmem:[%s1472_s30] sm:$0xff] %v398_v10  ;;  %v439_v19 = vmul.f32 %v438_v41, %v436_v1  ;;  %v508_v21 = vadd.f32 %v507_v14, %v503_v3  ;;  %v468_v22 = vmul.f32 %v467_v50, %v464_v20  ;;  %v472_v4 = vrot.slane %v464_v20, 4 }
  0xa9   : > { %v479_v23 = vrot.slane %v464_v20, 5  ;;  %v486_v24 = vrot.slane %v464_v20, 6  ;;  %v434_v25 = vadd.f32 %v433_v18, %v428_v15  ;;  %v492_v26 = vrot.slane %v464_v20, 7 }
  0xaa   : > { %v512_v27 = vmul.f32 %v1374_v6, %v511_v17  ;;  %v516_v28 = vstv %s1452_s3  ;;  %v471_v29 = vadd.f32 %v470_v51, %v468_v22  ;;  %v474_v30 = vsel %vm473_vm3, %v472_v4, 0.0  ;;  %s1000_s3 = scalar_lea.vmem %s1509_s14, 512 }
  0xab   : > { %v481_v31 = vsel %vm480_vm4, %v479_v23, 0.0  ;;  %v487_v32 = vsel %vm386_vm0, %v486_v24, 0.0  ;;  %v440_v6 = vadd.f32 %v439_v19, %v434_v25  ;;  %v477_v33 = vmul.f32 %v476_v59, %v474_v30  ;;  %p1001_p6 = scmp.ne.s32.totalorder %s1509_s14, %s1000_s3 }
  0xac   : > { %v484_v34 = vmul.f32 %v483_v60, %v481_v31  ;;  %v493_v35 = vsel %vm393_vm1, %v492_v26, 0.0  ;;  %v495_v36 = vstv %s1459_s19  ;;  %v513_v37 = vadd.f32 %v512_v27, %v508_v21  ;;  %s1004_s19 = sshll.u32 %s1104_s24, 4  ;;  %s1005_s19 = int_to_ptr.vmem [resolvable:$false] %s1004_s19 }
  0xad   : > { %v517_v38 = vmul.f32 %v1388_v12, %v516_v28  ;;  %744 = vst [vmem:[%s1472_s30 + $0x8] sm:$0xff] %v440_v6  ;;  %v478_v39 = vadd.f32 %v477_v33, %v471_v29  ;;  %v490_v40 = vmul.f32 %v489_v61, %v487_v32  ;;  %v496_v43 = vmul.f32 %v495_v36, %v493_v35  ;;  %p1002_p4 = pnand %p1001_p6, %p1597_p3  ;;  %s1006_s8 = scalar_lea.vmem %s1005_s19, 1024 }
  0xae   : > { %v524_v45 = vstv %s523_s29  ;;  %v527_v48 = vstv %s1477_s18  ;;  %v532_v49 = vstv %s1479_s17  ;;  %v538_v12 = vstv %s1487_s9  ;;  %p1007_p13 = scmp.lt.s32.totalorder %s1509_s14, %s1005_s19  ;;  %p1008_p0 = scmp.lt.s32.totalorder %s1006_s8, %s1000_s3 }
  0xaf   : > { %v518_v41 = vadd.f32 %v517_v38, %v513_v37  ;;  %v485_v42 = vadd.f32 %v484_v34, %v478_v39  ;;  %v544_v59 = vstv %s768_s7  ;;  %v550_v0 = vstv %s769_s15  ;;  %p1003_p9 = pneg %p1002_p4 }
  0xb0   : > { %p1009_p1 = por %p1008_p0, %p1007_p13 }
  0xb1   : > { %vm519_vm7 = vcmp.ge.f32.partialorder %v518_v41, 0.0  ;;  %v520_v44 = vmul.f32 0.2, %v518_v41  ;;  %v491_v46 = vadd.f32 %v490_v40, %v485_v42 }
  0xb2   : > { %p1010_p8 = pnand %p1009_p1, %p1003_p9 }
  0xb3   : > { %v521_v47 = vsel %vm519_vm7, %v518_v41, %v520_v44  ;;  %v497_v50 = vadd.f32 %v496_v43, %v491_v46 }
  0xb4   : > { %v525_v51 = vmul.f32 %v524_v45, %v521_v47  ;;  %v529_v52 = vrot.slane %v521_v47, 4  ;;  %v535_v53 = vrot.slane %v521_v47, 5  ;;  %v541_v54 = vrot.slane %v521_v47, 6 }
  0xb5   : > { %v547_v55 = vrot.slane %v521_v47, 7  ;;  %756 = vst [vmem:[%s1472_s30 + $0x10] sm:$0xff] %v497_v50 }
  0xb6   : > { %v528_v56 = vadd.f32 %v527_v48, %v525_v51  ;;  %v530_v57 = vsel %vm473_vm3, %v529_v52, 0.0  ;;  %v536_v58 = vsel %vm480_vm4, %v535_v53, 0.0  ;;  %v542_v62 = vsel %vm386_vm0, %v541_v54, 0.0 }
  0xb7   : > { %v533_v60 = vmul.f32 %v532_v49, %v530_v57  ;;  %v539_v61 = vmul.f32 %v538_v12, %v536_v58  ;;  %v548_v63 = vsel %vm393_vm1, %v547_v55, 0.0  ;;  %v545_v3 = vmul.f32 %v544_v59, %v542_v62 }
  0xb8   : > { %v551_v7 = vmul.f32 %v550_v0, %v548_v63 }
  0xb9   : > { %v534_v2 = vadd.f32 %v533_v60, %v528_v56 }
  0xbb   : > { %v540_v5 = vadd.f32 %v539_v61, %v534_v2 }
  0xbd   : > { %v546_v8 = vadd.f32 %v545_v3, %v540_v5 }
  0xbf   : > { %v552_v11 = vadd.f32 %v551_v7, %v546_v8 }
  0xc1   : > { %770 = vst [vmem:[%s1472_s30 + $0x18] sm:$0xff] %v552_v11 }
  0xc2   : > { %1013 = shalt.err (!%p1010_p8)
}
  0xc3   : > { %s1014_s10 = scalar_lea.hbm %s1514_s1, 512  ;;  %s1018_s17 = scalar_lea.hbm %s1570_s6, 1024 }
  0xc4   : > { %p1015_p7 = scmp.ne.s32.totalorder %s1514_s1, %s1014_s10  ;;  %p1019_p12 = scmp.lt.u32.totalorder %s1514_s1, %s1570_s6 }
  0xc5   : > { %p1020_p5 = scmp.lt.u32.totalorder %s1018_s17, %s1014_s10  ;;  %p1022_p6 = scmp.lt.u32.totalorder %s1014_s10, %s1514_s1 }
  0xc6   : > { %p1016_p10 = pnand %p1015_p7, %p1597_p3 }
  0xc7   : > { %p1021_p2 = por %p1020_p5, %p1019_p12 }
  0xc8   : > { %p1017_p11 = pneg %p1016_p10 }
  0xc9   : > { %p1023_p4 = por %p1022_p6, %p1021_p2 }
  0xcb   : > { %p1024_p9 = pnand %p1023_p4, %p1017_p11 }
  0xcd   : > { %1027 = shalt.err (!%p1024_p9)
}
  0xce   : > { %s1105_s7 = smov 128   ;;  %s1106_s15 = smov 8  }
  0xcf   : > { %800 = dma.vmem_to_hbm [thread:$0]  (%p1597_p3), %s1509_s14, 512, %s1514_s1, %s556_s2, %s1105_s7, %s1105_s7, %s1106_s15  }
  0xd0 PF: > { %s585_s16 = sand.u32 1, %s1074_s21   ;;  %p1598_p13 = scmp.ne.s32.totalorder %s1591_s11, 0 }
  0xd1   : > { %p1599_p0 = scmp.ge.s32.totalorder %s1094_s26, 2  ;;  %s586_s0 = scalar_lea.sflag [#allocation4], %s585_s16 }
  0xd3   : > { %p823_p1 = pnand %p1599_p0, %p1598_p13 }
  0xd5   : > { %1069 = dma.done.wait (!%p823_p1), %s586_s0, 512  }
  0xd6   : > { %1071 = vsyncadd (!%p823_p1), %s586_s0, 4294966784  ;;  %s25_s26 = sadd.s32 1, %s1094_s26   ;;  %s1600_s21 = smov %s1078_s22 }
  0xd7   : > { %p22_p8 = scmp.ge.s32.totalorder %s25_s26, 4   ;;  %s1601_s22 = smov %s1082_s23 }
  0xd8   : > { %s1602_s23 = smov %s1276_s13  ;;  %s1603_s24 = smov %s1090_s25 }
  0xd9   : > { %s1604_s25 = smov %s1606_s20  ;;  %24 = sbr.rel (!%p22_p8) target bundleno = 14 (0xe), region = 116 }
  0xe0   :  { %591 = vsyncpa [#allocation3], 1 }
  0xe1   :  { %593 = vsyncpa [#allocation3 + $0x1], 1 }
  0xe2   :  { %594 = vsyncpa [#allocation4], 1 }
  0xe3   :  { %596 = vsyncpa [#allocation4 + $0x1], 1 }
  0xe4   :  { %597 = vsyncpa [#allocation5], 1 }
  0xe5   :  { %599 = vsyncpa [#allocation5 + $0x1], 1 }
  0xe6   :  { %600 = vsyncpa [#allocation8], 1 }
  0xe7   :  { %601 = vsyncpa [#allocation11], 1 }

</bundles_post_ra>
